<compile_context>
chip_gen: v7x
topology: tpu7x:2x2x1
jax: 0.10.0
libtpu: 0.0.40
codegen_flags: <defaults>
</compile_context>

<pallas_src>
import jax
import jax.numpy as jnp
from jax.experimental import pallas as pl
from jax.experimental.pallas import tpu as pltpu

_LANE = 128


def _sse_kernel(w_ref, x_ref, o_ref):
    """One (batch, spatial-tile) block of sSE.

    w_ref: (C, 1)        f32 conv1x1 weight (per-channel scalar)
    x_ref: (1, C, T_HW)  input tile (original dtype)
    o_ref: (1, C, T_HW)  output tile (same dtype as x)
    """
    x_f32 = x_ref[0].astype(jnp.float32)                        # (C, T_HW)
    # 1x1 conv (no bias): per-channel scale then channel reduce (VPU mul/adds).
    y = jnp.sum(x_f32 * w_ref[...], axis=0, keepdims=True)      # (1, T_HW) f32
    # Exact sigmoid (HBM-bound, so the exact divide is free).
    gate = 1.0 / (1.0 + jnp.exp(-y))
    # Multiply in f32, cast once at the store; gate broadcasts over channels.
    o_ref[0] = (x_f32 * gate).astype(o_ref.dtype)


def _choose_tile_hw(C, HW, N, itemsize, *,
                    target_block_bytes=1 << 20, min_grid_steps=8):
    """Pick TILE_HW (multiple of 128 lanes):
       - per-block bytes (C * TILE_HW * itemsize) capped at ~target_block_bytes,
       - grid kept at >= min_grid_steps total steps when the input allows it."""
    max_hw = max(_LANE,
                 (target_block_bytes // max(1, C * itemsize)) // _LANE * _LANE)
    hw_full = pl.cdiv(HW, _LANE) * _LANE           # H*W rounded up to a lane multiple
    tile = min(max_hw, hw_full)

    steps_per_batch = pl.cdiv(min_grid_steps, max(1, N))
    if steps_per_batch > 1:
        per_step = pl.cdiv(pl.cdiv(HW, steps_per_batch), _LANE) * _LANE
        tile = min(tile, max(_LANE, per_step))
    return max(_LANE, tile)


def sse_forward(x, conv_weight, *, target_block_bytes=1 << 20):
    """x: (N, C, H, W); conv_weight: (1, C, 1, 1) as in nn.Conv2d(C, 1, 1, bias=False)."""
    N, C, H, W = x.shape
    HW = H * W
    itemsize = jnp.dtype(x.dtype).itemsize

    tile_hw = _choose_tile_hw(C, HW, N, itemsize,
                              target_block_bytes=target_block_bytes)
    grid = (N, pl.cdiv(HW, tile_hw))

    x3 = x.reshape(N, C, HW)                       # free view of contiguous NCHW
    w2 = conv_weight.reshape(C, 1).astype(jnp.float32)

    # VMEM budget: 2x input + 2x output blocks (double buffering) plus the
    # in-kernel f32 temporaries (x_f32 and the f32 product), plus headroom.
    block_bytes = C * tile_hw * itemsize
    f32_tmp_bytes = C * tile_hw * 4
    vmem_limit = int(min(48 << 20,
                         max(16 << 20,
                             4 * block_bytes + 3 * f32_tmp_bytes + (4 << 20))))

    cost = pl.CostEstimate(
        flops=int(N * HW * (3 * C + 2)),
        transcendentals=int(N * HW),
        bytes_accessed=int(2 * N * C * HW * itemsize + C * 4),
    )

    out = pl.pallas_call(
        _sse_kernel,
        out_shape=jax.ShapeDtypeStruct((N, C, HW), x.dtype),
        grid_spec=pltpu.PrefetchScalarGridSpec(
            num_scalar_prefetch=0,
            grid=grid,
            in_specs=[
                pl.BlockSpec((C, 1), lambda n, s: (0, 0)),           # weights (resident)
                pl.BlockSpec((1, C, tile_hw), lambda n, s: (n, 0, s)),
            ],
            out_specs=pl.BlockSpec((1, C, tile_hw), lambda n, s: (n, 0, s)),
        ),
        compiler_params=pltpu.CompilerParams(
            dimension_semantics=("parallel", "parallel"),
            vmem_limit_bytes=vmem_limit,
        ),
        cost_estimate=cost,
    )(w2, x3)

    return out.reshape(N, C, H, W)


def _sse_ref(x, conv_weight):
    y = jnp.sum(x.astype(jnp.float32) * conv_weight.reshape(1, -1, 1, 1),
                axis=1, keepdims=True)
    return (x.astype(jnp.float32) * (1.0 / (1.0 + jnp.exp(-y)))).astype(x.dtype)


if __name__ == "__main__":
    key = jax.random.PRNGKey(0)
    kx, kw, kx2, kx3 = jax.random.split(key, 4)

    # Small shapes consistent with the module: batch=2, channels=4, 16x16 spatial.
    N, C, H, W = 2, 4, 16, 16
    x = jax.random.normal(kx, (N, C, H, W), dtype=jnp.float32)
    conv_weight = jax.random.normal(kw, (1, C, 1, 1), dtype=jnp.float32) * 0.5

    out = jax.block_until_ready(sse_forward(x, conv_weight))
    assert out.shape == (N, C, H, W)
    assert jnp.allclose(out, _sse_ref(x, conv_weight), atol=1e-4, rtol=1e-4)

    # Ragged H*W (not a multiple of 128): handled by a partial last block,
    # no wrapper pad / slice.
    x2 = jax.random.normal(kx2, (1, C, 10, 10), dtype=jnp.float32)
    out2 = jax.block_until_ready(sse_forward(x2, conv_weight))
    assert out2.shape == x2.shape
    assert jnp.allclose(out2, _sse_ref(x2, conv_weight), atol=1e-4, rtol=1e-4)

    # Multi-tile spatial grid (H*W = 4096 splits into 8 spatial tiles).
    x3 = jax.random.normal(kx3, (1, C, 64, 64), dtype=jnp.float32)
    out3 = jax.block_until_ready(sse_forward(x3, conv_weight))
    assert out3.shape == x3.shape
    assert jnp.allclose(out3, _sse_ref(x3, conv_weight), atol=1e-4, rtol=1e-4)

    # bf16 input path (f32 accumulation / gate inside the kernel).
    xb = x.astype(jnp.bfloat16)
    outb = jax.block_until_ready(sse_forward(xb, conv_weight))
    assert outb.shape == (N, C, H, W)
    assert jnp.allclose(outb.astype(jnp.float32),
                        _sse_ref(xb, conv_weight).astype(jnp.float32),
                        atol=3e-2, rtol=3e-2)

    print("KERNEL_OK")
</pallas_src>

<mosaic_0001>
module attributes {stable_mosaic.version = 11 : i64} {
  func.func @_sse_kernel(%arg0: i32, %arg1: i32, %arg2: memref<4x1xf32, #tpu.memory_space<vmem>>, %arg3: memref<1x4x128xf32, #tpu.memory_space<vmem>>, %arg4: memref<1x4x128xf32, #tpu.memory_space<vmem>>) attributes {dimension_semantics = [#tpu.dimension_semantics<parallel>, #tpu.dimension_semantics<parallel>], iteration_bounds = array<i64: 2, 2>, scalar_prefetch = 0 : i64, scratch_operands = 0 : i64, tpu.core_type = #tpu.core_type<tc>, window_params = [{pipeline_mode = #tpu.pipeline_mode<synchronous>, transform_indices = @transform_0, window_bounds = array<i64: 4, 1>}, {transform_indices = @transform_1, window_bounds = array<i64: 1, 4, 128>}, {transform_indices = @transform_2, window_bounds = array<i64: 1, 4, 128>}]} {
    %c0 = arith.constant 0 : index
    %c0_0 = arith.constant 0 : index
    %c0_1 = arith.constant 0 : index
    %0 = vector.load %arg3[%c0, %c0_0, %c0_1] : memref<1x4x128xf32, #tpu.memory_space<vmem>>, vector<1x4x128xf32>
    %1 = vector.shape_cast %0 : vector<1x4x128xf32> to vector<4x128xf32>
    %c0_2 = arith.constant 0 : index
    %c0_3 = arith.constant 0 : index
    %2 = vector.load %arg2[%c0_2, %c0_3] : memref<4x1xf32, #tpu.memory_space<vmem>>, vector<4x1xf32>
    %3 = vector.broadcast %2 : vector<4x1xf32> to vector<4x128xf32>
    %4 = arith.mulf %1, %3 : vector<4x128xf32>
    %cst = arith.constant dense<0.000000e+00> : vector<128xf32>
    %5 = vector.multi_reduction <add>, %4, %cst [0] : vector<4x128xf32> to vector<128xf32>
    %6 = vector.shape_cast %5 : vector<128xf32> to vector<1x128xf32>
    %cst_4 = arith.constant 0.000000e+00 : f32
    %7 = vector.broadcast %cst_4 : f32 to vector<1x128xf32>
    %8 = arith.subf %7, %6 : vector<1x128xf32>
    %9 = math.exp %8 : vector<1x128xf32>
    %cst_5 = arith.constant 1.000000e+00 : f32
    %10 = vector.broadcast %cst_5 : f32 to vector<1x128xf32>
    %11 = arith.addf %10, %9 : vector<1x128xf32>
    %cst_6 = arith.constant 1.000000e+00 : f32
    %12 = vector.broadcast %cst_6 : f32 to vector<1x128xf32>
    %13 = arith.divf %12, %11 : vector<1x128xf32>
    %14 = vector.broadcast %13 : vector<1x128xf32> to vector<4x128xf32>
    %15 = arith.mulf %1, %14 : vector<4x128xf32>
    %c0_7 = arith.constant 0 : index
    %c0_8 = arith.constant 0 : index
    %c0_9 = arith.constant 0 : index
    %16 = vector.load %arg4[%c0_7, %c0_8, %c0_9] : memref<1x4x128xf32, #tpu.memory_space<vmem>>, vector<1x4x128xf32>
    %17 = vector.shape_cast %16 : vector<1x4x128xf32> to vector<4x128xf32>
    %18 = vector.shape_cast %15 : vector<4x128xf32> to vector<1x4x128xf32>
    tpu.vector_store %arg4[%c0_7, %c0_8, %c0_9], %18 {strides = array<i32>} : memref<1x4x128xf32, #tpu.memory_space<vmem>>, vector<1x4x128xf32>,
    return
  }
  func.func @transform_0(%arg0: i32, %arg1: i32) -> (i32, i32) {
    %c0_i32 = arith.constant 0 : i32
    %c0_i32_0 = arith.constant 0 : i32
    %c0_i32_1 = arith.constant 0 : i32
    return %c0_i32, %c0_i32_0 : i32, i32
  }
  func.func @transform_1(%arg0: i32, %arg1: i32) -> (i32, i32, i32) {
    %c0_i32 = arith.constant 0 : i32
    %c0_i32_0 = arith.constant 0 : i32
    return %arg0, %c0_i32, %arg1 : i32, i32, i32
  }
  func.func @transform_2(%arg0: i32, %arg1: i32) -> (i32, i32, i32) {
    %c0_i32 = arith.constant 0 : i32
    %c0_i32_0 = arith.constant 0 : i32
    return %arg0, %c0_i32, %arg1 : i32, i32, i32
  }
}

</mosaic_0001>

<bundles_post_ra>
// kernel: tpu_custom_call.1
= control target key start
LH: loop header
LB: loop body
LE: loop exit
PB: predicated region body
PF: predicated region fallthrough
CT: control target
= control target key end

     0   :  { %7 = vsyncpa [#allocation3], 0  ;;  %s746_s0 = inlined_call_operand.vmem [shape: f32[4,1], index: 0, kind: input, shape index: {}]   ;;  %s747_s1 = inlined_call_operand.hbm [shape: f32[2,4,256], index: 1, kind: input, shape index: {}]   ;;  %s748_s2 = inlined_call_operand.hbm [shape: f32[2,4,256], index: 2, kind: output, shape index: {}]  }
   0x1   :  { %9 = vsyncpa [#allocation3 + $0x1], 0 }
   0x2   :  { %10 = vsyncpa [#allocation4], 0 }
   0x3   :  { %12 = vsyncpa [#allocation4 + $0x1], 0  ;;  %s549_s9 = smov 0   ;;  %s551_s10 = smov 0  }
   0x4   :  { %s553_s11 = smov 0   ;;  %s555_s12 = smov 0  }
   0x5   :  { %s557_s13 = smov 0   ;;  %s559_s14 = smov 0  }
   0x6   :  { %s561_s15 = smov 0   ;;  %s563_s16 = smov 0  }
   0x7 LB: > { %s302_s17 = sadd.s32 4294967295, %s529_s16   ;;  %s303_s18 = sadd.s32 4294967294, %s529_s16   ;;  %s529_s16 = sphi %s563_s16, %s18_s16   ;;  %s525_s15 = sphi %s561_s15, %s765_s15   ;;  %s521_s14 = sphi %s559_s14, %s764_s14   ;;  %s517_s13 = sphi %s557_s13, %s763_s13   ;;  %s513_s12 = sphi %s555_s12, %s762_s12   ;;  %s509_s11 = sphi %s553_s11, %s761_s11   ;;  %s505_s10 = sphi %s551_s10, %s760_s10   ;;  %s501_s9 = sphi %s549_s9, %s759_s9  }
   0x8   : > { %s27_s19 = sadd.s32 1, %s521_s14  ;;  %s30_s20 = sadd.s32 1, %s525_s15 }
   0x9   : > { %p28_p0 = scmp.ge.s32.totalorder %s27_s19, 2  ;;  %s60_s21 = sadd.s32 1, %s509_s11 }
   0xa   : > { %p67_p1 = scmp.ne.s32.totalorder %s509_s11, %s505_s10  ;;  %p68_p2 = scmp.eq.s32.totalorder %s529_s16, 0 }
   0xb   : > { %s767_s19 = smov (%p28_p0, %s27_s19), 0  ;;  %s769_s20 = smov (!%p28_p0, %s30_s20), %s525_s15 }
   0xc   : > { %s56_s22 = ssub.s32 %s521_s14, %s767_s19  ;;  %p602_p3 = por %p68_p2, %p67_p1 }
   0xd   : > { %p32_p4 = scmp.ge.s32.totalorder %s769_s20, 2  ;;  %p73_p5 = scmp.ne.s32.totalorder %s505_s10, %s501_s9 }
   0xe   : > { %p74_p6 = scmp.eq.s32.totalorder %s302_s17, 0  ;;  %p99_p7 = scmp.eq.s32.totalorder %s302_s17, 3 }
   0xf   : > { %s771_s20 = smov (%p32_p4, %s769_s20), 0  ;;  %p105_p10 = scmp.eq.s32.totalorder %s303_s18, 3 }
  0x10   : > { %p610_p8 = por %p74_p6, %p73_p5  ;;  %p614_p9 = por %p99_p7, %p67_p1 }
  0x11   : > { %s55_s26 = ssub.s32 %s525_s15, %s771_s20  ;;  %p620_p12 = por %p105_p10, %p73_p5 }
  0x12   : > { %s752_s25 = scalar_select %p614_p9, 1, 0 }
  0x13   : > { %s57_s27 = sor.u32 %s56_s22, %s55_s26  ;;  %p329_p13 = scmp.lt.s32.totalorder %s529_s16, 4 }
  0x14   : > { %p58_p11 = scmp.eq.s32.totalorder %s57_s27, 0  ;;  %s128_s29 = sand.u32 1, %s509_s11  }
  0x15   : > { %s753_s28 = scalar_select %p620_p12, 1, 0 }
  0x16   : > { %s627_s30 = scalar_select %p58_p11, %s509_s11, %s60_s21  }
  0x17   : > { %s306_s3 = sshll.u32 %s128_s29, 2  ;;  %s307_s4 = sshll.u32 %s525_s15, 1 }
  0x18   : > { %s137_s5 = sadd.s32 %s521_s14, %s307_s4  ;;  %s132_s6 = scalar_lea.vmem [#allocation2], %s306_s3 }
  0x19   : > { %s141_s7 = sshll.u32 %s132_s6, 4  ;;  %s308_s8 = sshll.u32 %s137_s5, 6  ;;  %s631_s7 = int_to_ptr.vmem [resolvable:$true] %s141_s7 }
  0x1a   : > { %s636_s22 = scalar_lea.hbm %s747_s1, %s308_s8  ;;  %p640_p0 = pnand %p329_p13, %p602_p3 }
  0x1b   : > { %s129_s26 = scalar_lea.sflag [#allocation3], %s128_s29  ;;  %s401_s27 = scalar_lea.hbm %s636_s22, 64 }
  0x1c   : > { %p402_p4 = scmp.ne.s32.totalorder %s636_s22, %s401_s27  ;;  %p403_p5 = pneg %p640_p0 }
  0x1d   : > { %s406_s4 = scalar_lea.hbm %s747_s1, 256  ;;  %p407_p3 = scmp.lt.u32.totalorder %s636_s22, %s747_s1 }
  0x1e   : > { %p404_p6 = pnand %p403_p5, %p402_p4  ;;  %p408_p10 = scmp.lt.u32.totalorder %s406_s4, %s401_s27 }
  0x1f   : > { %p410_p13 = scmp.lt.u32.totalorder %s401_s27, %s636_s22 }
  0x20   : > { %p405_p7 = pneg %p404_p6  ;;  %p409_p11 = por %p408_p10, %p407_p3 }
  0x22   : > { %p411_p1 = por %p410_p13, %p409_p11 }
  0x24   : > { %p412_p2 = pnand %p411_p1, %p405_p7 }
  0x26   : > { %415 = shalt.err (!%p412_p2)
}
  0x27   : > { %s416_s29 = scalar_lea.vmem %s631_s7, 64  ;;  %s531_s8 = smov [#allocation2]  }
  0x28   : > { %p417_p4 = scmp.ne.s32.totalorder %s631_s7, %s416_s29  ;;  %s421_s17 = sshll.u32 %s531_s8, 4  ;;  %s422_s17 = int_to_ptr.vmem [resolvable:$false] %s421_s17 }
  0x29   : > { %s423_s18 = scalar_lea.vmem %s422_s17, 128  ;;  %p424_p9 = scmp.lt.s32.totalorder %s631_s7, %s422_s17 }
  0x2a   : > { %p419_p6 = pnand %p417_p4, %p403_p5  ;;  %p425_p3 = scmp.lt.s32.totalorder %s423_s18, %s416_s29 }
  0x2c   : > { %p420_p12 = pneg %p419_p6  ;;  %p426_p10 = por %p425_p3, %p424_p9 }
  0x2e   : > { %p427_p11 = pnand %p426_p10, %p420_p12 }
  0x30   : > { %430 = shalt.err (!%p427_p11)
}
  0x31   : > { %324 = dma.hbm_to_vmem [thread:$0]  (!%p640_p0), %s636_s22, 64, %s631_s7, %s129_s26  }
  0x32   : > { %p755_p1 = scmp.lt.s32.totalorder %s529_s16, 5  ;;  %p756_p2 = scmp.ge.s32.totalorder %s529_s16, 1 }
  0x34   : > { %p147_p5 = pnand %p756_p2, %p755_p1 }
  0x35   : > { %s676_s27 = sand.u32 (!%p147_p5), 1, %s505_s10  }
  0x36   : > { %150 = sbr.rel (%p147_p5) target bundleno = 251 (0xfb), region = 28  ;;  %s310_s23 = sshll.u32 (!%p147_p5), %s676_s27, 2 }
  0x37   : > { %s153_s3 = scalar_lea.sflag (!%p147_p5), [#allocation3], %s676_s27  ;;  %s156_s4 = scalar_lea.vmem (!%p147_p5), [#allocation2], %s310_s23 }
  0x3d   : > { %492 = dma.done.wait (%p610_p8), %s153_s3, 64  }
  0x3e   : > { %494 = vsyncadd (%p610_p8), %s153_s3, 4294967232  ;;  %v532_v0 = vmov 0   ;;  %v178_v1 = vld [vmem:[%s746_s0] sm:$0xf]  ;;  %vm185_vm0 = vcmask 1043456   ;;  %s313_s24 = sshll.u32 %s517_s13, 1 }
  0x3f   : > { %396 = vset.pattern.permute.xlu0 %v532_v0  ;;  %v177_v2 = vld [vmem:[%s156_s4] sm:$0xf]  ;;  %s213_s21 = sadd.s32 %s513_s12, %s313_s24  ;;  %s176_s5 = scalar_lea.vmem [#allocation5], %s310_s23 }
  0x40   : > { %181 = vperm.xlu0 %396, %v178_v1   ;;  %s314_s26 = sshll.u32 %s213_s21, 6  ;;  %s217_s6 = sshll.u32 %s176_s5, 4  ;;  %s694_s6 = int_to_ptr.vmem [resolvable:$true] %s217_s6 }
  0x41   : > { %s692_s17 = scalar_lea.hbm %s748_s2, %s314_s26  ;;  %s202_s18 = scalar_lea.sflag [#allocation4], %s676_s27 }
  0x42   : > { %s431_s3 = scalar_lea.vmem %s694_s6, 64  ;;  %p757_p9 = scmp.ne.s32.totalorder %s752_s25, 0 }
  0x43   : > { %p432_p8 = scmp.ne.s32.totalorder %s694_s6, %s431_s3  ;;  %s533_s12 = smov [#allocation5]  }
  0x44   : > { %s435_s13 = sshll.u32 %s533_s12, 4  ;;  %s436_s13 = int_to_ptr.vmem [resolvable:$false] %s435_s13 }
  0x45   : > { %p433_p12 = pnand %p432_p8, %p757_p9  ;;  %s437_s23 = scalar_lea.vmem %s436_s13, 128 }
  0x46   : > { %p438_p7 = scmp.lt.s32.totalorder %s694_s6, %s436_s13  ;;  %p439_p13 = scmp.lt.s32.totalorder %s437_s23, %s431_s3 }
  0x47   : > { %p434_p0 = pneg %p433_p12 }
  0x48   : > { %p440_p4 = por %p439_p13, %p438_p7 }
  0x4a   : > { %p441_p6 = pnand %p440_p4, %p434_p0 }
  0xbf   : > { %v182_v3 = vpop.permute.xlu0 %181 }
  0xc0   : > { %v184_v4 = vmul.f32 %v182_v3, %v177_v2 }
  0xc2   : > { %v186_v5 = vsel %vm185_vm0, %v184_v4, 0.0 }
  0xc3   : > { %v187_v6 = vrot.slane %v186_v5, 4 }
  0xc5   : > { %v188_v7 = vadd.f32 %v187_v6, %v186_v5 }
  0xc7   : > { %v189_v8 = vrot.slane %v188_v7, 2 }
  0xc9   : > { %v190_v9 = vadd.f32 %v189_v8, %v188_v7 }
  0xcb   : > { %v191_v10 = vrot.slane %v190_v9, 1 }
  0xcd   : > { %v192_v11 = vadd.f32 %v191_v10, %v190_v9 }
  0xcf   : > { %v193_v12 = vsub.f32 0.0, %v192_v11 }
  0xd1   : > { %v194_v13 = vmul.f32 1.442695, %v193_v12 }
  0xd3   : > { %397 = vpow2.f32 %v194_v13 }
  0xdd   : > { %v398_v14 = vpop.eup %397 }
  0xde   : > { %v196_v15 = vadd.f32 1.0, %v398_v14 }
  0xe0   : > { %399 = vrcp.f32 %v196_v15 }
  0xea   : > { %v400_v16 = vpop.eup %399 }
  0xeb   : > { %v199_v17 = vmul.f32 %v400_v16, %v177_v2 }
  0xed   : > { %200 = vst [vmem:[%s176_s5] sm:$0xf] %v199_v17 }
  0xee   : > { %444 = shalt.err (!%p441_p6)
}
  0xef   : > { %s445_s27 = scalar_lea.hbm %s692_s17, 64  ;;  %s449_s22 = scalar_lea.hbm %s748_s2, 256 }
  0xf0   : > { %p446_p3 = scmp.ne.s32.totalorder %s692_s17, %s445_s27  ;;  %p450_p1 = scmp.lt.u32.totalorder %s692_s17, %s748_s2 }
  0xf1   : > { %p451_p2 = scmp.lt.u32.totalorder %s449_s22, %s445_s27  ;;  %p453_p8 = scmp.lt.u32.totalorder %s445_s27, %s692_s17 }
  0xf2   : > { %p447_p10 = pnand %p446_p3, %p757_p9 }
  0xf3   : > { %p452_p5 = por %p451_p2, %p450_p1 }
  0xf4   : > { %p448_p11 = pneg %p447_p10 }
  0xf5   : > { %p454_p12 = por %p453_p8, %p452_p5 }
  0xf7   : > { %p455_p0 = pnand %p454_p12, %p448_p11 }
  0xf9   : > { %458 = shalt.err (!%p455_p0)
}
  0xfa   : > { %319 = dma.vmem_to_hbm [thread:$0]  (%p757_p9), %s694_s6, 64, %s692_s17, %s202_s18  }
  0xfb PF: > { %p330_p7 = scmp.ge.s32.totalorder %s529_s16, 2  ;;  %s229_s26 = sand.u32 1, %s501_s9  }
  0xfc   : > { %p758_p13 = scmp.ne.s32.totalorder %s753_s28, 0  ;;  %s230_s5 = scalar_lea.sflag [#allocation4], %s229_s26 }
  0xfe   : > { %p326_p4 = pnand %p330_p7, %p758_p13 }
 0x100   : > { %496 = dma.done.wait (!%p326_p4), %s230_s5, 64  }
 0x101   : > { %498 = vsyncadd (!%p326_p4), %s230_s5, 4294967232  ;;  %s18_s16 = sadd.s32 1, %s529_s16   ;;  %s759_s9 = smov %s505_s10 }
 0x102   : > { %p15_p6 = scmp.ge.s32.totalorder %s18_s16, 6   ;;  %s760_s10 = smov %s509_s11 }
 0x103   : > { %s761_s11 = smov %s627_s30  ;;  %s762_s12 = smov %s521_s14 }
 0x104   : > { %s763_s13 = smov %s525_s15  ;;  %s764_s14 = smov %s767_s19 }
 0x105   : > { %s765_s15 = smov %s771_s20  ;;  %17 = sbr.rel (!%p15_p6) target bundleno = 7 (0x7), region = 73 }
 0x10c   :  { %235 = vsyncpa [#allocation3], 1 }
 0x10d   :  { %237 = vsyncpa [#allocation3 + $0x1], 1 }
 0x10e   :  { %238 = vsyncpa [#allocation4], 1 }
 0x10f   :  { %240 = vsyncpa [#allocation4 + $0x1], 1 }

</bundles_post_ra>
